<compile_context>
chip_gen: v7x
topology: tpu7x:2x2x1
jax: 0.10.0
libtpu: 0.0.40
codegen_flags: <defaults>
</compile_context>

<pallas_src>
import functools

import jax
import jax.numpy as jnp
from jax.experimental import pallas as pl
from jax.experimental.pallas import tpu as pltpu

FP16_EPS = 0.0009765625  # torch.finfo(torch.float16).eps
LANES = 128
DEFAULT_MAX_BLOCK_ROWS = 4096          # 4096 x 128 x f32 = 2 MiB per slab per step
VMEM_LIMIT_BYTES = 32 * 1024 * 1024    # explicit so the big tile also fits on v5e


def _round_up(x, m):
    return ((x + m - 1) // m) * m


# ---------------------------------------------------------------------------
# Kernels (pure elementwise, lane-dense (rows, 128) tiles)
# ---------------------------------------------------------------------------
def _rgb_kernel(rgb_ref, tgt_ref, out_ref):
    diff = rgb_ref[...] - tgt_ref[...]
    out_ref[...] = diff * diff


def _fused_kernel(rgb_ref, tgt_ref, opp_ref, rgb_out_ref, opa_out_ref, *, neg_lam):
    diff = rgb_ref[...] - tgt_ref[...]
    rgb_out_ref[...] = diff * diff
    o = opp_ref[...] + FP16_EPS
    # neg_lam = -lambda_opacity (sign folded into the scale); log goes to EUP.
    opa_out_ref[...] = neg_lam * (o * jnp.log(o))
    # TODO(synk): optional in-kernel mean reduction (would drop the two output
    # writes, ~1.5x for bandwidth-bound callers) changes the module contract.


# ---------------------------------------------------------------------------
# Layout plumbing (lane-dense slabs, copy-free in the common case)
# ---------------------------------------------------------------------------
def _to_slab(x, rows, pad_value):
    """Flatten x into a lane-dense (rows, 128) slab.

    Free (pure reshape, no HBM copy) when x.size == rows * 128; otherwise pads
    the tail (only for ragged sizes / arrays smaller than one block).
    Returns (slab, padded_flag).
    """
    flat = x.reshape(-1)
    total = rows * LANES
    padded = flat.size != total
    if padded:
        flat = jnp.pad(flat, (0, total - flat.size), constant_values=pad_value)
    return flat.reshape(rows, LANES), padded


def _from_slab(slab, n, shape, padded):
    flat = slab.reshape(-1)
    if padded:
        flat = flat[:n]      # only copies on the (rare) padded path
    return flat.reshape(shape)


def _plan(rows_total, max_block_rows, min_blocks):
    """Pick (rows_per_block, num_blocks).

    Guarantees (num_blocks - 1) * rows_per_block < rows_total, so no block of
    the primary (rgb) array starts out of bounds and waste is < one block.
    min_blocks (default 2) keeps both v7x TensorCores busy for non-tiny inputs.
    """
    if rows_total < 16:
        min_blocks = 1
    nb = max(min_blocks, pl.cdiv(rows_total, max_block_rows))
    rpb = _round_up(pl.cdiv(rows_total, nb), 8)
    nb = pl.cdiv(rows_total, rpb)
    return rpb, nb


# ---------------------------------------------------------------------------
# Wrapper: fused pallas_call
# ---------------------------------------------------------------------------
def nerf_losses(rgb, target, opp=None, lambda_opacity=0.0,
                *, max_block_rows=DEFAULT_MAX_BLOCK_ROWS, min_blocks=2):
    rgb_shape, n_rgb = rgb.shape, rgb.size
    rgb_rows_total = pl.cdiv(n_rgb, LANES)

    rpb, nb = _plan(rgb_rows_total, max_block_rows, min_blocks)
    rgb_slab_rows = max(rgb_rows_total, rpb)   # block never exceeds the slab
    rgb2, rgb_padded = _to_slab(rgb, rgb_slab_rows, 0.0)
    tgt2, _ = _to_slab(target, rgb_slab_rows, 0.0)

    rgb_spec = pl.BlockSpec((rpb, LANES), lambda i: (i, 0))
    cparams = pltpu.CompilerParams(
        dimension_semantics=("parallel",),
        vmem_limit_bytes=VMEM_LIMIT_BYTES,
    )
    itemsize = jnp.dtype(rgb.dtype).itemsize
    # TODO(synk): optional bf16 I/O path (halves input DMA bytes) not added.

    if lambda_opacity > 0:
        n_opp = opp.size
        opp_rows_total = pl.cdiv(n_opp, LANES)
        # Opacity shares the rgb grid; size its block so nb blocks cover it.
        opp_rpb = _round_up(pl.cdiv(opp_rows_total, nb), 8)
        opp_slab_rows = max(opp_rows_total, opp_rpb)
        opp2, opp_padded = _to_slab(opp, opp_slab_rows, 0.5)  # pad safe for log

        opp_nb_valid = pl.cdiv(opp_slab_rows, opp_rpb)
        if opp_nb_valid < nb:
            # Extra grid steps clamp onto the last valid opacity block: no DMA
            # ever starts out of bounds, redundant steps rewrite identical data.
            last = opp_nb_valid - 1
            opp_spec = pl.BlockSpec((opp_rpb, LANES),
                                    lambda i: (jnp.minimum(i, last), 0))
        else:
            opp_spec = pl.BlockSpec((opp_rpb, LANES), lambda i: (i, 0))

        cost = pl.CostEstimate(
            flops=2 * rgb2.size + 3 * opp2.size,
            transcendentals=opp2.size,
            bytes_accessed=(3 * rgb2.size + 2 * opp2.size) * itemsize,
        )
        rgb_out, opa_out = pl.pallas_call(
            functools.partial(_fused_kernel, neg_lam=-float(lambda_opacity)),
            out_shape=(
                jax.ShapeDtypeStruct(rgb2.shape, rgb.dtype),
                jax.ShapeDtypeStruct(opp2.shape, opp.dtype),
            ),
            grid=(nb,),
            in_specs=[rgb_spec, rgb_spec, opp_spec],
            out_specs=(rgb_spec, opp_spec),
            compiler_params=cparams,
            cost_estimate=cost,
        )(rgb2, tgt2, opp2)

        return {
            "rgb": _from_slab(rgb_out, n_rgb, rgb_shape, rgb_padded),
            "opacity": _from_slab(opa_out, n_opp, opp.shape, opp_padded),
        }

    cost = pl.CostEstimate(
        flops=2 * rgb2.size,
        transcendentals=0,
        bytes_accessed=3 * rgb2.size * itemsize,
    )
    rgb_out = pl.pallas_call(
        _rgb_kernel,
        out_shape=jax.ShapeDtypeStruct(rgb2.shape, rgb.dtype),
        grid=(nb,),
        in_specs=[rgb_spec, rgb_spec],
        out_specs=rgb_spec,
        compiler_params=cparams,
        cost_estimate=cost,
    )(rgb2, tgt2)
    return {"rgb": _from_slab(rgb_out, n_rgb, rgb_shape, rgb_padded)}


class NeRFLoss:
    """JAX/Pallas port of the PyTorch NeRFLoss module (forward only)."""

    def __init__(self, lambda_opacity=0.0, lambda_distortion=0.0):
        self.lambda_opacity = lambda_opacity
        self.lambda_distortion = lambda_distortion

    def __call__(self, rgb, target, opp=None, distkwargs=None):
        if self.lambda_distortion > 0:
            # TODO(synk): distortion loss raises NotImplementedError in the
            # reference PyTorch module as well; nothing to implement.
            raise NotImplementedError
        return nerf_losses(rgb, target, opp, self.lambda_opacity)


# ---------------------------------------------------------------------------
# Main
# ---------------------------------------------------------------------------
if __name__ == "__main__":
    key = jax.random.PRNGKey(0)
    k_rgb, k_tgt, k_opp = jax.random.split(key, 3)

    n_rays, channels = 1024, 3
    rgb = jax.random.uniform(k_rgb, (n_rays, channels), dtype=jnp.float32)
    target = jax.random.uniform(k_tgt, (n_rays, channels), dtype=jnp.float32)
    opp = jax.random.uniform(
        k_opp, (n_rays,), dtype=jnp.float32, minval=0.01, maxval=0.99
    )

    loss_fn = NeRFLoss(lambda_opacity=0.01, lambda_distortion=0.0)
    out = loss_fn(rgb, target, opp=opp)
    jax.block_until_ready(out)

    # Multi-block grid (exercises the shared-grid opacity clamp path).
    out_small = nerf_losses(rgb, target, opp, 0.01, max_block_rows=8)
    # Ragged sizes (size % 128 != 0 -> pad fallback path) and rgb-only path.
    out_ragged = nerf_losses(rgb[:100], target[:100], opp[:100], 0.01)
    out_rgb_only = nerf_losses(rgb, target)
    jax.block_until_ready((out_small, out_ragged, out_rgb_only))

    # Reference check (plain JAX).
    ref_rgb = (rgb - target) ** 2
    o = opp + FP16_EPS
    ref_opa = 0.01 * (-o * jnp.log(o))
    for res in (out, out_small):
        assert jnp.allclose(res["rgb"], ref_rgb, atol=1e-6, rtol=1e-6)
        assert jnp.allclose(res["opacity"], ref_opa, atol=1e-6, rtol=1e-6)
    assert jnp.allclose(out_ragged["rgb"], ref_rgb[:100], atol=1e-6, rtol=1e-6)
    assert jnp.allclose(out_ragged["opacity"], ref_opa[:100], atol=1e-6, rtol=1e-6)
    assert jnp.allclose(out_rgb_only["rgb"], ref_rgb, atol=1e-6, rtol=1e-6)
    assert "opacity" not in out_rgb_only

    print("KERNEL_OK")
</pallas_src>

<mosaic_0001>
module attributes {stable_mosaic.version = 11 : i64} {
  func.func @_fused_kernel(%arg0: i32, %arg1: memref<16x128xf32, #tpu.memory_space<vmem>>, %arg2: memref<16x128xf32, #tpu.memory_space<vmem>>, %arg3: memref<8x128xf32, #tpu.memory_space<vmem>>, %arg4: memref<16x128xf32, #tpu.memory_space<vmem>>, %arg5: memref<8x128xf32, #tpu.memory_space<vmem>>) attributes {dimension_semantics = [#tpu.dimension_semantics<parallel>], iteration_bounds = array<i64: 2>, scalar_prefetch = 0 : i64, scratch_operands = 0 : i64, tpu.core_type = #tpu.core_type<tc>, window_params = [{transform_indices = @transform_0, window_bounds = array<i64: 16, 128>}, {transform_indices = @transform_1, window_bounds = array<i64: 16, 128>}, {transform_indices = @transform_2, window_bounds = array<i64: 8, 128>}, {transform_indices = @transform_3, window_bounds = array<i64: 16, 128>}, {transform_indices = @transform_4, window_bounds = array<i64: 8, 128>}]} {
    %c0 = arith.constant 0 : index
    %c0_0 = arith.constant 0 : index
    %0 = vector.load %arg1[%c0, %c0_0] : memref<16x128xf32, #tpu.memory_space<vmem>>, vector<16x128xf32>
    %c0_1 = arith.constant 0 : index
    %c0_2 = arith.constant 0 : index
    %1 = vector.load %arg2[%c0_1, %c0_2] : memref<16x128xf32, #tpu.memory_space<vmem>>, vector<16x128xf32>
    %2 = arith.subf %0, %1 : vector<16x128xf32>
    %3 = arith.mulf %2, %2 : vector<16x128xf32>
    %c0_3 = arith.constant 0 : index
    %c0_4 = arith.constant 0 : index
    %4 = vector.load %arg4[%c0_3, %c0_4] : memref<16x128xf32, #tpu.memory_space<vmem>>, vector<16x128xf32>
    tpu.vector_store %arg4[%c0_3, %c0_4], %3 {strides = array<i32>} : memref<16x128xf32, #tpu.memory_space<vmem>>, vector<16x128xf32>,
    %c0_5 = arith.constant 0 : index
    %c0_6 = arith.constant 0 : index
    %5 = vector.load %arg3[%c0_5, %c0_6] : memref<8x128xf32, #tpu.memory_space<vmem>>, vector<8x128xf32>
    %cst = arith.constant 9.765625E-4 : f32
    %6 = vector.broadcast %cst : f32 to vector<8x128xf32>
    %7 = arith.addf %5, %6 : vector<8x128xf32>
    %8 = math.log %7 : vector<8x128xf32>
    %9 = arith.mulf %7, %8 : vector<8x128xf32>
    %cst_7 = arith.constant -0.00999999977 : f32
    %10 = vector.broadcast %cst_7 : f32 to vector<8x128xf32>
    %11 = arith.mulf %10, %9 : vector<8x128xf32>
    %c0_8 = arith.constant 0 : index
    %c0_9 = arith.constant 0 : index
    %12 = vector.load %arg5[%c0_8, %c0_9] : memref<8x128xf32, #tpu.memory_space<vmem>>, vector<8x128xf32>
    tpu.vector_store %arg5[%c0_8, %c0_9], %11 {strides = array<i32>} : memref<8x128xf32, #tpu.memory_space<vmem>>, vector<8x128xf32>,
    return
  }
  func.func @transform_0(%arg0: i32) -> (i32, i32) {
    %c0_i32 = arith.constant 0 : i32
    %c0_i32_0 = arith.constant 0 : i32
    return %arg0, %c0_i32 : i32, i32
  }
  func.func @transform_1(%arg0: i32) -> (i32, i32) {
    %c0_i32 = arith.constant 0 : i32
    %c0_i32_0 = arith.constant 0 : i32
    return %arg0, %c0_i32 : i32, i32
  }
  func.func @transform_2(%arg0: i32) -> (i32, i32) {
    %c0_i32 = arith.constant 0 : i32
    %0 = arith.minsi %arg0, %c0_i32 : i32
    %c0_i32_0 = arith.constant 0 : i32
    %c0_i32_1 = arith.constant 0 : i32
    return %0, %c0_i32_0 : i32, i32
  }
  func.func @transform_3(%arg0: i32) -> (i32, i32) {
    %c0_i32 = arith.constant 0 : i32
    %c0_i32_0 = arith.constant 0 : i32
    return %arg0, %c0_i32 : i32, i32
  }
  func.func @transform_4(%arg0: i32) -> (i32, i32) {
    %c0_i32 = arith.constant 0 : i32
    %0 = arith.minsi %arg0, %c0_i32 : i32
    %c0_i32_0 = arith.constant 0 : i32
    %c0_i32_1 = arith.constant 0 : i32
    return %0, %c0_i32_0 : i32, i32
  }
}

</mosaic_0001>

<bundles_post_ra>
// kernel: tpu_custom_call.1
= control target key start
LH: loop header
LB: loop body
LE: loop exit
PB: predicated region body
PF: predicated region fallthrough
CT: control target
= control target key end

     0   :  { %s1289_s0 = inlined_call_operand.hbm [shape: f32[24,128], index: 0, kind: input, shape index: {}]   ;;  %s1290_s1 = inlined_call_operand.hbm [shape: f32[24,128], index: 1, kind: input, shape index: {}]   ;;  %s1291_s2 = inlined_call_operand.hbm [shape: f32[8,128], index: 2, kind: input, shape index: {}]   ;;  %s1292_s3 = inlined_call_operand.hbm [shape: f32[24,128], index: 3, kind: output, shape index: {0}]   ;;  %s1293_s4 = inlined_call_operand.hbm [shape: f32[8,128], index: 4, kind: output, shape index: {1}]  }
   0x1   :  { %1305 = sst [smem:[#allocation23_spill]] %s1289_s0 }
   0x2   :  { %10 = vsyncpa [#allocation3], 0 }
   0x3   :  { %12 = vsyncpa [#allocation3 + $0x1], 0 }
   0x4   :  { %13 = vsyncpa [#allocation6], 0 }
   0x5   :  { %15 = vsyncpa [#allocation6 + $0x1], 0 }
   0x6   :  { %16 = vsyncpa [#allocation4], 0 }
   0x7   :  { %18 = vsyncpa [#allocation4 + $0x1], 0 }
   0x8   :  { %19 = vsyncpa [#allocation10], 0 }
   0x9   :  { %21 = vsyncpa [#allocation10 + $0x1], 0  ;;  %s917_s15 = smov 0   ;;  %s919_s16 = smov 0  }
   0xa   :  { %s921_s17 = smov 0   ;;  %s923_s18 = smov 0  }
   0xb   :  { %s925_s19 = smov 0   ;;  %s927_s20 = smov 0  }
   0xc   :  { %s929_s21 = smov 0  }
   0xd LB: > { %1306 = sst [smem:[#allocation16_spill]] %s855_s15  ;;  %s953_s22 = sadd.s32 4294967295, %s879_s21   ;;  %s879_s21 = sphi %s929_s21, %s1335_s21   ;;  %s875_s20 = sphi %s927_s20, %s1343_s20   ;;  %s871_s19 = sphi %s925_s19, %s1342_s19   ;;  %s867_s18 = sphi %s923_s18, %s1341_s18   ;;  %s863_s17 = sphi %s921_s17, %s1340_s17   ;;  %s859_s16 = sphi %s919_s16, %s1339_s16   ;;  %s855_s15 = sphi %s917_s15, %s1338_s15  }
   0xe   : > { %1307 = sst [smem:[#allocation17_spill]] %s867_s18  ;;  %s547_s23 = sadd.s32 4294967294, %s879_s21  }
   0xf   : > { %s957_s24 = sadd.s32 1, %s879_s21   ;;  %s34_s25 = sadd.s32 1, %s875_s20 }
  0x10   : > { %1308 = sst [smem:[#allocation18_spill]] %s957_s24  ;;  %s31_s26 = ssub.s32 %s879_s21, %s957_s24 }
  0x11   : > { %p41_p0 = scmp.ne.s32.totalorder %s875_s20, %s871_s19  ;;  %p32_p1 = scmp.eq.s32.totalorder %s31_s26, 0 }
  0x12   : > { %p42_p2 = scmp.eq.s32.totalorder %s879_s21, 0  ;;  %p1294_p3 = scmp.ne.s32.totalorder %s871_s19, %s867_s18 }
  0x13   : > { %p48_p4 = scmp.eq.s32.totalorder %s953_s22, 0  ;;  %p83_p7 = scmp.lt.s32.totalorder %s879_s21, 0 }
  0x14   : > { %s969_s27 = scalar_select %p32_p1, %s875_s20, %s34_s25  }
  0x15   : > { %p974_p5 = por %p42_p2, %p41_p0  ;;  %p983_p6 = por %p48_p4, %p1294_p3 }
  0x16   : > { %1309 = sst [smem:[#allocation19_spill]] %s969_s27  ;;  %p85_p8 = scmp.lt.s32.totalorder %s957_s24, 0 }
  0x17   : > { %s1311_s29 = scalar_select %p983_p6, 1, 0 }
  0x18   : > { %s90_s30 = sadd.s32 1, %s863_s17  ;;  %p97_p9 = scmp.ne.s32.totalorder %s863_s17, %s859_s16 }
  0x19   : > { %s993_s5 = scalar_select %p83_p7, %s879_s21, 0 }
  0x1a   : > { %s86_s6 = scalar_select %p85_p8, %s957_s24, 0 }
  0x1b   : > { %p999_p10 = por %p97_p9, %p42_p2  ;;  %p103_p11 = scmp.ne.s32.totalorder %s859_s16, %s855_s15 }
  0x1c   : > { %s87_s8 = ssub.s32 %s993_s5, %s86_s6  ;;  %p127_p12 = scmp.eq.s32.totalorder %s953_s22, 1 }
  0x1d   : > { %p88_p13 = scmp.eq.s32.totalorder %s87_s8, 0  ;;  %p1009_p1 = por %p103_p11, %p48_p4 }
  0x1e   : > { %p1016_p3 = por %p127_p12, %p41_p0  ;;  %p133_p7 = scmp.eq.s32.totalorder %s547_s23, 1 }
  0x1f   : > { %s1313_s9 = scalar_select %p1009_p1, 1, 0 }
  0x20   : > { %s1314_s10 = scalar_select %p1016_p3, 1, 0 }
  0x21   : > { %s1021_s11 = scalar_select %p88_p13, %s863_s17, %s90_s30  }
  0x22   : > { %p1316_p2 = scmp.ne.s32.totalorder %s871_s19, %s867_s18  ;;  %p1033_p6 = por %p127_p12, %p97_p9 }
  0x23   : > { %1315 = sst [smem:[#allocation20_spill]] %s1021_s11  ;;  %p1037_p4 = por %p133_p7, %p103_p11 }
  0x24   : > { %p1026_p8 = por %p133_p7, %p1316_p2  ;;  %p1302_p0 = scmp.ge.s32.totalorder %s879_s21, 2 }
  0x25   : > { %s1319_s13 = scalar_select %p1033_p6, 1, 0 }
  0x26   : > { %s1317_s12 = scalar_select %p1026_p8, 1, 0 }
  0x27   : > { %s1320_s14 = scalar_select %p1037_p4, 1, 0 }
  0x28   : > { %1318 = sst [smem:[#allocation21_spill]] %s1317_s12  ;;  %179 = sbr.rel (%p1302_p0) target bundleno = 148 (0x94), region = 16 }
  0x29   : > { %1321 = sst [smem:[#allocation22_spill]] %s1320_s14 }
  0x2f   : > { %182 = sbr.rel (!%p974_p5) target bundleno = 87 (0x57), region = 20  ;;  %s183_s23 = sand.u32 (%p974_p5), 1, %s875_s20  }
  0x30   : > { %s551_s25 = sshll.u32 (%p974_p5), %s879_s21, 1  ;;  %s550_s26 = sshll.u32 (%p974_p5), %s183_s23, 4 }
  0x31   : > { %s189_s30 = ssub.s32 (%p974_p5), 3, %s551_s25  ;;  %s1051_s27 = scalar_lea.sflag (%p974_p5), [#allocation3], %s183_s23 }
  0x32   : > { %p190_p9 = scmp.lt.s32.totalorder (%p974_p5), %s189_s30, 2  ;;  %s187_s11 = scalar_lea.vmem (%p974_p5), [#allocation2], %s550_s26 }
  0x36   : > { %s1345_s30 = smov (!%p190_p9, %s189_s30), 2 }
  0x37   : > { %s1048_s6 = sshll.u32 %s1345_s30, 7 }
  0x38   : > { %s194_s8 = ssub.s32 256, %s1048_s6 }
  0x39   : > { %195 = vsyncadd %s1051_s27, %s194_s8  ;;  %p553_p11 = scmp.ne.s32.totalorder %s1048_s6, 0  ;;  %s583_s24 = sshll.u32 %s879_s21, 8 }
  0x3a   : > { %s1322_s0 = sld [smem:[#allocation23_spill]]  ;;  %s200_s23 = sshll.u32 %s187_s11, 4  ;;  %s1061_s23 = int_to_ptr.vmem [resolvable:$true] %s200_s23 }
  0x40   : > { %s1059_s25 = scalar_lea.hbm %s1322_s0, %s583_s24  ;;  %s669_s12 = scalar_lea.hbm %s1322_s0, 384 }
  0x41   : > { %s665_s26 = scalar_lea.hbm %s1059_s25, %s1048_s6  ;;  %p670_p2 = scmp.lt.u32.totalorder %s1059_s25, %s1322_s0 }
  0x42   : > { %p666_p12 = scmp.ne.s32.totalorder %s1059_s25, %s665_s26  ;;  %p671_p9 = scmp.lt.u32.totalorder %s669_s12, %s665_s26 }
  0x43   : > { %p673_p4 = scmp.lt.u32.totalorder %s665_s26, %s1059_s25 }
  0x44   : > { %p667_p13 = pnand %p666_p12, %p553_p11  ;;  %p672_p0 = por %p671_p9, %p670_p2 }
  0x46   : > { %p668_p7 = pneg %p667_p13  ;;  %p674_p8 = por %p673_p4, %p672_p0 }
  0x48   : > { %p675_p6 = pnand %p674_p8, %p668_p7 }
  0x4a   : > { %678 = shalt.err (!%p675_p6)
}
  0x4b   : > { %s679_s24 = scalar_lea.vmem %s1061_s23, %s1048_s6  ;;  %s881_s11 = smov [#allocation2]  }
  0x4c   : > { %p680_p12 = scmp.ne.s32.totalorder %s1061_s23, %s679_s24  ;;  %s683_s14 = sshll.u32 %s881_s11, 4  ;;  %s684_s14 = int_to_ptr.vmem [resolvable:$false] %s683_s14 }
  0x4d   : > { %s685_s18 = scalar_lea.vmem %s684_s14, 512  ;;  %p686_p1 = scmp.lt.s32.totalorder %s1061_s23, %s684_s14 }
  0x4e   : > { %p681_p13 = pnand %p680_p12, %p553_p11  ;;  %p687_p2 = scmp.lt.s32.totalorder %s685_s18, %s679_s24 }
  0x50   : > { %p682_p3 = pneg %p681_p13  ;;  %p688_p9 = por %p687_p2, %p686_p1 }
  0x52   : > { %p689_p4 = pnand %p688_p9, %p682_p3 }
  0x54   : > { %692 = shalt.err (!%p689_p4)
}
  0x55   : > { %s882_s12 = smov 128   ;;  %s883_s26 = smov 8  }
  0x56   : > { %206 = dma.hbm_to_vmem [thread:$0]  (%p553_p11), %s1059_s25, %s1048_s6, %s1061_s23, %s1051_s27, %s882_s12, %s882_s12, %s883_s26  }
  0x57 PF: > { %209 = sbr.rel (!%p974_p5) target bundleno = 122 (0x7a), region = 24  ;;  %s210_s30 = sand.u32 (%p974_p5), 1, %s879_s21  }
  0x58   : > { %s212_s8 = sand.u32 (%p974_p5), 1, %s875_s20   ;;  %s558_s24 = sshll.u32 (%p974_p5), %s879_s21, 1 }
  0x59   : > { %s557_s15 = sshll.u32 (%p974_p5), %s212_s8, 4  ;;  %s216_s11 = ssub.s32 (%p974_p5), 3, %s558_s24 }
  0x5a   : > { %p217_p3 = scmp.lt.s32.totalorder (%p974_p5), %s216_s11, 2  ;;  %s1096_s0 = scalar_lea.sflag (%p974_p5), [#allocation6], %s210_s30 }
  0x5b   : > { %s214_s27 = scalar_lea.vmem (%p974_p5), [#allocation5], %s557_s15 }
  0x5e   : > { %s1347_s11 = smov (!%p217_p3, %s216_s11), 2 }
  0x5f   : > { %s1093_s14 = sshll.u32 %s1347_s11, 7 }
  0x60   : > { %s221_s18 = ssub.s32 256, %s1093_s14 }
  0x61   : > { %222 = vsyncadd %s1096_s0, %s221_s18  ;;  %p560_p5 = scmp.ne.s32.totalorder %s1093_s14, 0  ;;  %s584_s28 = sshll.u32 %s879_s21, 8 }
  0x62   : > { %s1104_s23 = scalar_lea.hbm %s1290_s1, %s584_s28  ;;  %s227_s12 = sshll.u32 %s214_s27, 4  ;;  %s1106_s12 = int_to_ptr.vmem [resolvable:$true] %s227_s12 }
  0x63   : > { %s693_s26 = scalar_lea.hbm %s1104_s23, %s1093_s14  ;;  %s697_s15 = scalar_lea.hbm %s1290_s1, 384 }
  0x64   : > { %p694_p6 = scmp.ne.s32.totalorder %s1104_s23, %s693_s26  ;;  %p698_p0 = scmp.lt.u32.totalorder %s1104_s23, %s1290_s1 }
  0x65   : > { %p699_p11 = scmp.lt.u32.totalorder %s697_s15, %s693_s26  ;;  %p701_p12 = scmp.lt.u32.totalorder %s693_s26, %s1104_s23 }
  0x66   : > { %p695_p1 = pnand %p694_p6, %p560_p5 }
  0x67   : > { %p700_p7 = por %p699_p11, %p698_p0 }
  0x68   : > { %p696_p8 = pneg %p695_p1 }
  0x69   : > { %p702_p13 = por %p701_p12, %p700_p7 }
  0x6b   : > { %p703_p2 = pnand %p702_p13, %p696_p8 }
  0x6d   : > { %706 = shalt.err (!%p703_p2)
}
  0x6e   : > { %s707_s18 = scalar_lea.vmem %s1106_s12, %s1093_s14  ;;  %s884_s27 = smov [#allocation5]  }
  0x6f   : > { %p708_p9 = scmp.ne.s32.totalorder %s1106_s12, %s707_s18  ;;  %s711_s28 = sshll.u32 %s884_s27, 4  ;;  %s712_s28 = int_to_ptr.vmem [resolvable:$false] %s711_s28 }
  0x70   : > { %s713_s6 = scalar_lea.vmem %s712_s28, 512  ;;  %p714_p6 = scmp.lt.s32.totalorder %s1106_s12, %s712_s28 }
  0x71   : > { %p709_p4 = pnand %p708_p9, %p560_p5  ;;  %p715_p1 = scmp.lt.s32.totalorder %s713_s6, %s707_s18 }
  0x73   : > { %p710_p3 = pneg %p709_p4  ;;  %p716_p0 = por %p715_p1, %p714_p6 }
  0x75   : > { %p717_p11 = pnand %p716_p0, %p710_p3 }
  0x77   : > { %720 = shalt.err (!%p717_p11)
}
  0x78   : > { %s885_s25 = smov 128   ;;  %s886_s26 = smov 8  }
  0x79   : > { %233 = dma.hbm_to_vmem [thread:$0]  (%p560_p5), %s1104_s23, %s1093_s14, %s1106_s12, %s1096_s0, %s885_s25, %s885_s25, %s886_s26  }
  0x7a PF: > { %s237_s30 = sand.u32 1, %s879_s21   ;;  %s239_s8 = sand.u32 1, %s863_s17  }
  0x7b   : > { %s564_s15 = sshll.u32 %s239_s8, 3  ;;  %s565_s24 = sshll.u32 %s993_s5, 7 }
  0x7c   : > { %s1139_s27 = scalar_lea.hbm %s1291_s2, %s565_s24  ;;  %s241_s28 = scalar_lea.vmem [#allocation7], %s564_s15 }
  0x7d   : > { %s250_s0 = sshll.u32 %s241_s28, 4  ;;  %s238_s14 = scalar_lea.sflag [#allocation6], %s237_s30  ;;  %s251_s0 = int_to_ptr.vmem [resolvable:$true] %s250_s0 }
  0x7e   : > { %s721_s23 = scalar_lea.hbm %s1139_s27, 128  ;;  %s725_s6 = scalar_lea.hbm %s1291_s2, 128 }
  0x7f   : > { %p722_p5 = scmp.ne.s32.totalorder %s1139_s27, %s721_s23  ;;  %p726_p12 = scmp.lt.u32.totalorder %s1139_s27, %s1291_s2 }
  0x80   : > { %p727_p13 = scmp.lt.u32.totalorder %s725_s6, %s721_s23  ;;  %p729_p9 = scmp.lt.u32.totalorder %s721_s23, %s1139_s27 }
  0x81   : > { %p723_p8 = pnand %p722_p5, %p999_p10 }
  0x82   : > { %p728_p2 = por %p727_p13, %p726_p12 }
  0x83   : > { %p724_p7 = pneg %p723_p8 }
  0x84   : > { %p730_p4 = por %p729_p9, %p728_p2 }
  0x86   : > { %p731_p3 = pnand %p730_p4, %p724_p7 }
  0x88   : > { %734 = shalt.err (!%p731_p3)
}
  0x89   : > { %s735_s30 = scalar_lea.vmem %s251_s0, 128  ;;  %s887_s8 = smov [#allocation7]  }
  0x8a   : > { %p736_p6 = scmp.ne.s32.totalorder %s251_s0, %s735_s30  ;;  %s739_s15 = sshll.u32 %s887_s8, 4  ;;  %s740_s15 = int_to_ptr.vmem [resolvable:$false] %s739_s15 }
  0x8b   : > { %s741_s24 = scalar_lea.vmem %s740_s15, 256  ;;  %p742_p11 = scmp.lt.s32.totalorder %s251_s0, %s740_s15 }
  0x8c   : > { %p737_p1 = pnand %p736_p6, %p999_p10  ;;  %p743_p5 = scmp.lt.s32.totalorder %s741_s24, %s735_s30 }
  0x8e   : > { %p738_p0 = pneg %p737_p1  ;;  %p744_p8 = por %p743_p5, %p742_p11 }
  0x90   : > { %p745_p12 = pnand %p744_p8, %p738_p0 }
  0x92   : > { %748 = shalt.err (!%p745_p12)
}
  0x93   : > { %586 = dma.hbm_to_vmem [thread:$0]  (%p999_p10), %s1139_s27, 128, %s251_s0, %s238_s14  }
  0x94 PF: > { %p566_p7 = scmp.ge.s32.totalorder %s879_s21, 1  ;;  %p255_p13 = scmp.lt.s32.totalorder %s879_s21, 3 }
  0x96   : > { %p256_p2 = pnand %p566_p7, %p255_p13 }
  0x97   : > { %s1161_s11 = sand.u32 (!%p256_p2), 1, %s871_s19   ;;  %p1323_p9 = scmp.ne.s32.totalorder (!%p256_p2), %s1311_s29, 0 }
  0x98   : > { %259 = sbr.rel (%p256_p2) target bundleno = 244 (0xf4), region = 32  ;;  %s567_s18 = sshll.u32 (!%p256_p2), %s1161_s11, 4 }
  0x99   : > { %s262_s28 = scalar_lea.sflag (!%p256_p2), [#allocation3], %s1161_s11  ;;  %s265_s23 = scalar_lea.vmem (!%p256_p2), [#allocation2], %s567_s18 }
  0x9f   : > { %834 = dma.done.wait (%p1323_p9), %s262_s28, 256  }
  0xa0   : > { %836 = vsyncadd (%p1323_p9), %s262_s28, 4294967040  ;;  %s270_s7 = sand.u32 1, %s953_s22   ;;  %s274_s0 = scalar_lea.vmem [#allocation5], %s567_s18 }
  0xa1   : > { %s271_s27 = scalar_lea.sflag [#allocation6], %s270_s7 }
  0xa2   : > { %838 = dma.done.wait (%p1323_p9), %s271_s27, 256  }
  0xa3   : > { %840 = vsyncadd (%p1323_p9), %s271_s27, 4294967040  ;;  %s281_s14 = sand.u32 1, %s859_s16   ;;  %p1324_p10 = scmp.ne.s32.totalorder %s1313_s9, 0 }
  0xa4   : > { %s1175_s12 = sshll.u32 %s281_s14, 3 }
  0xa5   : > { %s283_s5 = scalar_lea.vmem [#allocation7], %s1175_s12 }
  0xa6   : > { %842 = dma.done.wait (%p1324_p10), %s271_s27, 128  }
  0xa7   : > { %844 = vsyncadd (%p1324_p10), %s271_s27, 4294967168  ;;  %v342_v0 = vld [vmem:[%s265_s23] sm:$0xff]  ;;  %v343_v2 = vld [vmem:[%s265_s23 + $0x8] sm:$0xff]  ;;  %s315_s29 = scalar_lea.vmem [#allocation8], %s567_s18  ;;  %s322_s9 = scalar_lea.vmem [#allocation9], %s1175_s12 }
  0xa8   : > { %v344_v1 = vld [vmem:[%s274_s0] sm:$0xff]  ;;  %v345_v4 = vld [vmem:[%s274_s0 + $0x8] sm:$0xff]  ;;  %s360_s6 = scalar_lea.sflag [#allocation4], %s1161_s11  ;;  %s1186_s25 = scalar_lea.sflag [#allocation10], %s281_s14 }
  0xa9   : > { %v346_v3 = vsub.f32 %v342_v0, %v344_v1  ;;  %v352_v5 = vld [vmem:[%s283_s5] sm:$0xff]  ;;  %v347_v6 = vsub.f32 %v343_v2, %v345_v4  ;;  %p1325_p4 = scmp.ne.s32.totalorder %s1314_s10, 0 }
  0xaa   : > { %v353_v7 = vadd.f32 0.0009765625, %v352_v5  ;;  %s574_s26 = sshll.u32 (%p1325_p4), %s953_s22, 1 }
  0xab   : > { %v348_v8 = vmul.f32 %v346_v3, %v346_v3  ;;  %v349_v9 = vmul.f32 %v347_v6, %v347_v6  ;;  %s373_s30 = ssub.s32 (%p1325_p4), 3, %s574_s26 }
  0xac   : > { %663 = vlog2.f32 %v353_v7  ;;  %p374_p3 = scmp.lt.s32.totalorder (%p1325_p4), %s373_s30, 2 }
  0xad   : > { %350 = vst [vmem:[%s315_s29] sm:$0xff] %v348_v8  ;;  %351 = vst [vmem:[%s315_s29 + $0x8] sm:$0xff] %v349_v9 }
  0xb6   : > { %v664_v10 = vpop.eup %663 }
  0xb7   : > { %v355_v11 = vmul.f32 0.6931472, %v664_v10  ;;  %371 = sbr.rel (!%p1325_p4) target bundleno = 218 (0xda), region = 48 }
  0xb9   : > { %v356_v12 = vmul.f32 %v355_v11, %v353_v7 }
  0xbb   : > { %v357_v13 = vmul.f32 -0.01, %v356_v12 }
  0xbd   : > { %358 = vst [vmem:[%s322_s9] sm:$0xff] %v357_v13 }
  0xbe   : > { %s1349_s30 = smov (!%p374_p3, %s373_s30), 2 }
  0xbf   : > { %s1191_s8 = sshll.u32 %s1349_s30, 7 }
  0xc0   : > { %s378_s15 = ssub.s32 256, %s1191_s8 }
  0xc1   : > { %379 = vsyncadd %s360_s6, %s378_s15  ;;  %p576_p6 = scmp.ne.s32.totalorder %s1191_s8, 0  ;;  %s585_s24 = sshll.u32 %s953_s22, 8 }
  0xc2   : > { %s1201_s28 = scalar_lea.hbm %s1292_s3, %s585_s24  ;;  %s384_s23 = sshll.u32 %s315_s29, 4  ;;  %s1203_s23 = int_to_ptr.vmem [resolvable:$true] %s384_s23 }
  0xc3   : > { %s749_s7 = scalar_lea.vmem %s1203_s23, %s1191_s8  ;;  %s888_s27 = smov [#allocation8]  }
  0xc4   : > { %p750_p1 = scmp.ne.s32.totalorder %s1203_s23, %s749_s7  ;;  %s753_s0 = sshll.u32 %s888_s27, 4  ;;  %s754_s0 = int_to_ptr.vmem [resolvable:$false] %s753_s0 }
  0xc5   : > { %s755_s14 = scalar_lea.vmem %s754_s0, 512  ;;  %p756_p5 = scmp.lt.s32.totalorder %s1203_s23, %s754_s0 }
  0xc6   : > { %p751_p0 = pnand %p750_p1, %p576_p6  ;;  %p757_p8 = scmp.lt.s32.totalorder %s755_s14, %s749_s7 }
  0xc8   : > { %p752_p11 = pneg %p751_p0  ;;  %p758_p12 = por %p757_p8, %p756_p5 }
  0xca   : > { %p759_p7 = pnand %p758_p12, %p752_p11 }
  0xcc   : > { %762 = shalt.err (!%p759_p7)
}
  0xcd   : > { %s763_s5 = scalar_lea.hbm %s1201_s28, %s1191_s8  ;;  %s767_s30 = scalar_lea.hbm %s1292_s3, 384 }
  0xce   : > { %p764_p13 = scmp.ne.s32.totalorder %s1201_s28, %s763_s5  ;;  %p768_p10 = scmp.lt.u32.totalorder %s1201_s28, %s1292_s3 }
  0xcf   : > { %p769_p4 = scmp.lt.u32.totalorder %s767_s30, %s763_s5  ;;  %p771_p1 = scmp.lt.u32.totalorder %s763_s5, %s1201_s28 }
  0xd0   : > { %p765_p2 = pnand %p764_p13, %p576_p6 }
  0xd1   : > { %p770_p3 = por %p769_p4, %p768_p10 }
  0xd2   : > { %p766_p9 = pneg %p765_p2 }
  0xd3   : > { %p772_p0 = por %p771_p1, %p770_p3 }
  0xd5   : > { %p773_p11 = pnand %p772_p0, %p766_p9 }
  0xd7   : > { %776 = shalt.err (!%p773_p11)
}
  0xd8   : > { %s889_s10 = smov 128   ;;  %s890_s18 = smov 8  }
  0xd9   : > { %390 = dma.vmem_to_hbm [thread:$0]  (%p576_p6), %s1203_s23, %s1191_s8, %s1201_s28, %s360_s6, %s889_s10, %s889_s10, %s890_s18  }
  0xda PF: > { %p394_p5 = scmp.lt.s32.totalorder %s953_s22, 0  ;;  %s402_s7 = sshll.u32 %s322_s9, 4  ;;  %s1235_s7 = int_to_ptr.vmem [resolvable:$true] %s402_s7 }
  0xdb   : > { %s777_s6 = scalar_lea.vmem %s1235_s7, 128  ;;  %p1326_p8 = scmp.ne.s32.totalorder %s1319_s13, 0 }
  0xdc   : > { %s1351_s22 = smov (!%p394_p5, %s953_s22), 0  ;;  %p778_p6 = scmp.ne.s32.totalorder %s1235_s7, %s777_s6 }
  0xdd   : > { %s580_s27 = sshll.u32 %s1351_s22, 7  ;;  %s891_s8 = smov [#allocation9]  }
  0xde   : > { %s400_s11 = scalar_lea.hbm %s1293_s4, %s580_s27  ;;  %p779_p12 = pnand %p778_p6, %p1326_p8 }
  0xdf   : > { %s781_s28 = sshll.u32 %s891_s8, 4  ;;  %s782_s28 = int_to_ptr.vmem [resolvable:$false] %s781_s28 }
  0xe0   : > { %p780_p7 = pneg %p779_p12  ;;  %s783_s12 = scalar_lea.vmem %s782_s28, 256 }
  0xe1   : > { %p784_p13 = scmp.lt.s32.totalorder %s1235_s7, %s782_s28  ;;  %p785_p2 = scmp.lt.s32.totalorder %s783_s12, %s777_s6 }
  0xe3   : > { %p786_p9 = por %p785_p2, %p784_p13 }
  0xe5   : > { %p787_p10 = pnand %p786_p9, %p780_p7 }
  0xe7   : > { %790 = shalt.err (!%p787_p10)
}
  0xe8   : > { %s791_s9 = scalar_lea.hbm %s400_s11, 128  ;;  %s795_s5 = scalar_lea.hbm %s1293_s4, 128 }
  0xe9   : > { %p792_p4 = scmp.ne.s32.totalorder %s400_s11, %s791_s9  ;;  %p796_p0 = scmp.lt.u32.totalorder %s400_s11, %s1293_s4 }
  0xea   : > { %p797_p11 = scmp.lt.u32.totalorder %s795_s5, %s791_s9  ;;  %p799_p6 = scmp.lt.u32.totalorder %s791_s9, %s400_s11 }
  0xeb   : > { %p793_p3 = pnand %p792_p4, %p1326_p8 }
  0xec   : > { %p798_p5 = por %p797_p11, %p796_p0 }
  0xed   : > { %p794_p1 = pneg %p793_p3 }
  0xee   : > { %p800_p12 = por %p799_p6, %p798_p5 }
  0xf0   : > { %p801_p7 = pnand %p800_p12, %p794_p1 }
  0xf2   : > { %804 = shalt.err (!%p801_p7)
}
  0xf3   : > { %590 = dma.vmem_to_hbm [thread:$0]  (%p1326_p8), %s1235_s7, 128, %s400_s11, %s1186_s25  }
  0xf4 PF: > { %s1327_s30 = sld [smem:[#allocation17_spill]]  ;;  %s1328_s15 = sld [smem:[#allocation21_spill]] }
  0xf5   : > { %p1330_p2 = scmp.ge.s32.totalorder %s879_s21, 2 }
  0xfa   : > { %s414_s24 = sand.u32 1, %s1327_s30   ;;  %p1329_p13 = scmp.ne.s32.totalorder %s1328_s15, 0 }
  0xfb   : > { %s415_s10 = scalar_lea.sflag [#allocation4], %s414_s24 }
  0xfc   : > { %p594_p9 = pnand %p1330_p2, %p1329_p13 }
  0xfe   : > { %846 = dma.done.wait (!%p594_p9), %s415_s10, 256  }
  0xff   : > { %848 = vsyncadd (!%p594_p9), %s415_s10, 4294967040  ;;  %s1331_s18 = sld [smem:[#allocation16_spill]]  ;;  %s1332_s27 = sld [smem:[#allocation22_spill]] }
 0x100   : > { %p1334_p4 = pmov %p1330_p2 }
 0x105   : > { %s423_s0 = sand.u32 1, %s1331_s18   ;;  %p1333_p10 = scmp.ne.s32.totalorder %s1332_s27, 0 }
 0x106   : > { %s424_s13 = scalar_lea.sflag [#allocation10], %s423_s0 }
 0x107   : > { %p597_p3 = pnand %p1334_p4, %p1333_p10 }
 0x109   : > { %850 = dma.done.wait (!%p597_p3), %s424_s13, 128  }
 0x10a   : > { %852 = vsyncadd (!%p597_p3), %s424_s13, 4294967168  ;;  %s1335_s21 = sld [smem:[#allocation18_spill]]  ;;  %s1336_s25 = sld [smem:[#allocation20_spill]] }
 0x10b   : > { %s1337_s7 = sld [smem:[#allocation19_spill]]  ;;  %s1338_s15 = smov %s859_s16 }
 0x10c   : > { %s1339_s16 = smov %s863_s17  ;;  %s1341_s18 = smov %s871_s19 }
 0x10d   : > { %s1342_s19 = smov %s875_s20 }
 0x110   : > { %p24_p8 = scmp.ge.s32.totalorder %s1335_s21, 4   ;;  %s1340_s17 = smov %s1336_s25 }
 0x111   : > { %s1343_s20 = smov %s1337_s7 }
 0x112   :  { %26 = sbr.rel (!%p24_p8) target bundleno = 13 (0xd), region = 118 }
 0x119   :  { %429 = vsyncpa [#allocation3], 1 }
 0x11a   :  { %431 = vsyncpa [#allocation3 + $0x1], 1 }
 0x11b   :  { %432 = vsyncpa [#allocation6], 1 }
 0x11c   :  { %434 = vsyncpa [#allocation6 + $0x1], 1 }
 0x11d   :  { %435 = vsyncpa [#allocation4], 1 }
 0x11e   :  { %437 = vsyncpa [#allocation4 + $0x1], 1 }
 0x11f   :  { %438 = vsyncpa [#allocation10], 1 }
 0x120   :  { %440 = vsyncpa [#allocation10 + $0x1], 1 }

</bundles_post_ra>
